<compile_context>
chip_gen: v7x
topology: tpu7x:2x2x1
jax: 0.10.0
libtpu: 0.0.40
codegen_flags: <defaults>
</compile_context>

<pallas_src>
import functools

import jax
import jax.numpy as jnp
from jax.experimental import pallas as pl
from jax.experimental.pallas import tpu as pltpu


def _round_up(x, m):
    return (x + m - 1) // m * m


def _largest_divisor_le(n, cap):
    d = max(1, min(cap, n))
    while n % d:
        d -= 1
    return d


# ---------------------------------------------------------------------------
# Kernels
# ---------------------------------------------------------------------------

def sage_layer_kernel(a_ref, xin_ref, xself_ref, dinv_ref, wl_ref, wr_ref, b_ref,
                      h_ref, acc_ref, *, tk, xin_resident):
    """One SAGEConv layer: tiled sum-aggregation, f32 1/deg, two fused dots, ReLU."""
    k = pl.program_id(1)

    if xin_resident:
        off = pl.multiple_of(k * tk, tk)
        xk = xin_ref[pl.ds(off, tk), :]          # VMEM-resident, sliced per k block
    else:
        xk = xin_ref[...]                        # streamed (TK, F) block

    part = jnp.dot(a_ref[...], xk, preferred_element_type=jnp.float32)

    @pl.when(k == 0)
    def _first():
        acc_ref[...] = part                      # no separate zero-init pass

    @pl.when(k > 0)
    def _accum():
        acc_ref[...] += part

    @pl.when(k == pl.num_programs(1) - 1)
    def _finalize():
        # mean aggregation: f32 counts-sum * f32 reciprocal degree
        agg = (acc_ref[...] * dinv_ref[...]).astype(wl_ref.dtype)
        h = jnp.dot(agg, wl_ref[...], preferred_element_type=jnp.float32)
        h = h + jnp.dot(xself_ref[...], wr_ref[...], preferred_element_type=jnp.float32)
        h = h + b_ref[...]
        h_ref[...] = jnp.maximum(h, 0.0).astype(h_ref.dtype)


def sage_classifier_kernel(a_ref, hin_ref, hself_ref, dinv_ref, wl_ref, wr_ref, b_ref,
                           wc_ref, bc_ref, out_ref, acc_ref, *, tk, xin_resident):
    """Second SAGEConv layer with the linear classifier fused into the finalize."""
    k = pl.program_id(1)

    if xin_resident:
        off = pl.multiple_of(k * tk, tk)
        hk = hin_ref[pl.ds(off, tk), :]
    else:
        hk = hin_ref[...]

    part = jnp.dot(a_ref[...], hk, preferred_element_type=jnp.float32)

    @pl.when(k == 0)
    def _first():
        acc_ref[...] = part

    @pl.when(k > 0)
    def _accum():
        acc_ref[...] += part

    @pl.when(k == pl.num_programs(1) - 1)
    def _finalize():
        agg = (acc_ref[...] * dinv_ref[...]).astype(wl_ref.dtype)
        h2 = jnp.dot(agg, wl_ref[...], preferred_element_type=jnp.float32)
        h2 = h2 + jnp.dot(hself_ref[...], wr_ref[...], preferred_element_type=jnp.float32)
        h2 = jnp.maximum(h2 + b_ref[...], 0.0)
        logits = jnp.dot(h2.astype(wc_ref.dtype), wc_ref[...],
                         preferred_element_type=jnp.float32) + bc_ref[...]
        out_ref[...] = logits.astype(out_ref.dtype)


# ---------------------------------------------------------------------------
# Wrapper
# ---------------------------------------------------------------------------

def _pad_weight(w, in_pad, out_pad):
    fin, fout = w.shape
    return (jnp.zeros((in_pad, out_pad), jnp.float32)
            .at[:fin, :fout].set(w).astype(jnp.bfloat16))


def _pad_bias(b, out_pad):
    return jnp.zeros((1, out_pad), jnp.float32).at[0, :b.shape[0]].set(b)


def two_layer_sage_forward(x, edge_index, params, *, tm=256, tk=1024,
                           resident_limit=4 * 1024 * 1024):
    """x: [N, F] f32; edge_index: [2, E] int32 (edges symmetrized, as in the module)."""
    N, F = x.shape
    (w1l, w1r, b1), (w2l, w2r, b2), (wc, bc) = params
    H1, H2, C = w1l.shape[1], w2l.shape[1], wc.shape[1]

    N_pad = _round_up(N, 128)
    F_pad = _round_up(F, 128)
    H1_pad = _round_up(H1, 128)
    H2_pad = _round_up(H2, 128)
    C_pad = _round_up(C, 128)

    # --- tile selection --------------------------------------------------------------
    # TK (reduction) large to amortize per-grid-step overhead on the HBM-bound A stream;
    # TM capped so >=2 row blocks exist when possible (v7x dual-TC sharding).
    m = N_pad // 128
    tk_blocks = _largest_divisor_le(m, max(1, tk // 128))
    tm_cap = max(1, tm // 128)
    if m >= 2:
        tm_cap = max(1, min(tm_cap, m // 2))
    tm_blocks = _largest_divisor_le(m, tm_cap)
    TM, TK = 128 * tm_blocks, 128 * tk_blocks

    # --- glue: bf16 edge-count matrix + f32 reciprocal degree -------------------------
    ei = jnp.concatenate([edge_index, edge_index[::-1, :]], axis=1)
    src, dst = ei[0], ei[1]
    # counts[i, j] = #edges j->i, built directly in bf16 (small ints exact)
    counts = jnp.zeros((N_pad, N_pad), jnp.bfloat16).at[dst, src].add(1.0)
    deg = jnp.zeros((N_pad,), jnp.float32).at[dst].add(1.0)        # E-scale scatter
    dinv = (1.0 / jnp.maximum(deg, 1.0)).reshape(N_pad, 1)         # f32, folded in-kernel

    x_pad = jnp.zeros((N_pad, F_pad), jnp.bfloat16).at[:N, :F].set(x.astype(jnp.bfloat16))

    w1l_p, w1r_p = _pad_weight(w1l, F_pad, H1_pad), _pad_weight(w1r, F_pad, H1_pad)
    b1_p = _pad_bias(b1, H1_pad)
    w2l_p, w2r_p = _pad_weight(w2l, H1_pad, H2_pad), _pad_weight(w2r, H1_pad, H2_pad)
    b2_p = _pad_bias(b2, H2_pad)
    wc_p = _pad_weight(wc, H2_pad, C_pad)
    bc_p = _pad_bias(bc, C_pad)

    grid = (N_pad // TM, N_pad // TK)
    cparams = pltpu.CompilerParams(
        dimension_semantics=("parallel", "arbitrary"),
        vmem_limit_bytes=48 * 1024 * 1024)   # safe on v7x (64 MiB) and v5e/v6e (128 MiB)

    a_spec = pl.BlockSpec((TM, TK), lambda i, k: (i, k))
    row_spec = lambda D: pl.BlockSpec((TM, D), lambda i, k: (i, 0))      # fixed per i
    dinv_spec = pl.BlockSpec((TM, 1), lambda i, k: (i, 0))
    const_spec = lambda arr: pl.BlockSpec(arr.shape, lambda i, k: (0, 0))  # VMEM-resident

    def xin_spec(cols, itemsize):
        # Whole-array resident (DMAed once, sliced with pl.ds in-kernel) when it fits;
        # otherwise stream (TK, cols) blocks along the reduction axis.
        if N_pad * cols * itemsize <= resident_limit:
            return pl.BlockSpec((N_pad, cols), lambda i, k: (0, 0)), True
        return pl.BlockSpec((TK, cols), lambda i, k: (k, 0)), False

    # ---- layer 1: h1 = relu(mean(A, x) @ W1_l + x @ W1_r + b1) -----------------------
    x_spec, x_res = xin_spec(F_pad, 2)
    h1 = pl.pallas_call(
        functools.partial(sage_layer_kernel, tk=TK, xin_resident=x_res),
        out_shape=jax.ShapeDtypeStruct((N_pad, H1_pad), jnp.bfloat16),
        grid_spec=pltpu.PrefetchScalarGridSpec(
            num_scalar_prefetch=0, grid=grid,
            in_specs=[a_spec, x_spec, row_spec(F_pad), dinv_spec,
                      const_spec(w1l_p), const_spec(w1r_p), const_spec(b1_p)],
            out_specs=row_spec(H1_pad),
            scratch_shapes=[pltpu.VMEM((TM, F_pad), jnp.float32)]),
        compiler_params=cparams,
    )(counts, x_pad, x_pad, dinv, w1l_p, w1r_p, b1_p)

    # ---- layer 2 + classifier: (relu(mean(A, h1) @ W2_l + h1 @ W2_r + b2)) @ Wc + bc --
    h_spec, h_res = xin_spec(H1_pad, 2)
    out_pad = pl.pallas_call(
        functools.partial(sage_classifier_kernel, tk=TK, xin_resident=h_res),
        out_shape=jax.ShapeDtypeStruct((N_pad, C_pad), jnp.float32),
        grid_spec=pltpu.PrefetchScalarGridSpec(
            num_scalar_prefetch=0, grid=grid,
            in_specs=[a_spec, h_spec, row_spec(H1_pad), dinv_spec,
                      const_spec(w2l_p), const_spec(w2r_p), const_spec(b2_p),
                      const_spec(wc_p), const_spec(bc_p)],
            out_specs=row_spec(C_pad),
            scratch_shapes=[pltpu.VMEM((TM, H1_pad), jnp.float32)]),
        compiler_params=cparams,
    )(counts, h1, h1, dinv, w2l_p, w2r_p, b2_p, wc_p, bc_p)

    return out_pad[:N, :C]


# ---------------------------------------------------------------------------
# Params / reference
# ---------------------------------------------------------------------------

def init_params(key, num_features, h1, h2, num_classes):
    """Deterministic synthetic weights, stored [in_dim, out_dim] (pre-transposed)."""
    ks = jax.random.split(key, 8)
    s1 = 1.0 / jnp.sqrt(num_features)
    s2 = 1.0 / jnp.sqrt(h1)
    s3 = 1.0 / jnp.sqrt(h2)
    w1l = jax.random.uniform(ks[0], (num_features, h1), jnp.float32, -s1, s1)
    w1r = jax.random.uniform(ks[1], (num_features, h1), jnp.float32, -s1, s1)
    b1 = jax.random.uniform(ks[2], (h1,), jnp.float32, -s1, s1)
    w2l = jax.random.uniform(ks[3], (h1, h2), jnp.float32, -s2, s2)
    w2r = jax.random.uniform(ks[4], (h1, h2), jnp.float32, -s2, s2)
    b2 = jax.random.uniform(ks[5], (h2,), jnp.float32, -s2, s2)
    wc = jax.random.uniform(ks[6], (h2, num_classes), jnp.float32, -s3, s3)
    bc = jax.random.uniform(ks[7], (num_classes,), jnp.float32, -s3, s3)
    return (w1l, w1r, b1), (w2l, w2r, b2), (wc, bc)


def reference_forward(x, edge_index, params):
    """Pure-JAX reference mirroring the kernel's precision strategy (bf16 matmul inputs,
    f32 accumulation, f32 reciprocal degree) so tolerances stay tight."""
    N = x.shape[0]
    f32, bf16 = jnp.float32, jnp.bfloat16
    (w1l, w1r, b1), (w2l, w2r, b2), (wc, bc) = params

    ei = jnp.concatenate([edge_index, edge_index[::-1, :]], axis=1)
    src, dst = ei[0], ei[1]
    counts = jnp.zeros((N, N), bf16).at[dst, src].add(1.0)
    deg = jnp.zeros((N,), f32).at[dst].add(1.0)
    dinv = (1.0 / jnp.maximum(deg, 1.0)).reshape(N, 1)

    xc = x.astype(bf16)
    agg1 = (jnp.dot(counts, xc, preferred_element_type=f32) * dinv).astype(bf16)
    h1 = (jnp.dot(agg1, w1l.astype(bf16), preferred_element_type=f32)
          + jnp.dot(xc, w1r.astype(bf16), preferred_element_type=f32) + b1)
    h1 = jnp.maximum(h1, 0.0).astype(bf16)

    agg2 = (jnp.dot(counts, h1, preferred_element_type=f32) * dinv).astype(bf16)
    h2 = (jnp.dot(agg2, w2l.astype(bf16), preferred_element_type=f32)
          + jnp.dot(h1, w2r.astype(bf16), preferred_element_type=f32) + b2)
    h2 = jnp.maximum(h2, 0.0)

    return jnp.dot(h2.astype(bf16), wc.astype(bf16), preferred_element_type=f32) + bc


# ---------------------------------------------------------------------------
# Main
# ---------------------------------------------------------------------------

if __name__ == "__main__":
    key = jax.random.PRNGKey(0)
    k_x, k_e, k_p, k_x2, k_e2 = jax.random.split(key, 5)

    NUM_FEATURES = 20    # module's `num_features = 20`
    H1, H2 = 32, 32      # sage_hidden_units1/2
    NUM_CLASSES = 5      # len(label_mapping)

    params = init_params(k_p, NUM_FEATURES, H1, H2, NUM_CLASSES)

    # --- toy size from the module spec (single tile) ---
    N, E = 16, 40
    x = jax.random.normal(k_x, (N, NUM_FEATURES), jnp.float32)
    edge_index = jax.random.randint(k_e, (2, E), 0, N, jnp.int32)
    out = jax.block_until_ready(two_layer_sage_forward(x, edge_index, params))
    ref = reference_forward(x, edge_index, params)
    assert out.shape == (N, NUM_CLASSES)
    assert jnp.allclose(out, ref, atol=1e-2, rtol=1e-2), \
        f"toy mismatch: max abs diff = {float(jnp.max(jnp.abs(out - ref)))}"

    # --- larger graph, default tiles (wide reduction tile, resident feature operand) ---
    N2, E2 = 300, 1500
    x2 = jax.random.normal(k_x2, (N2, NUM_FEATURES), jnp.float32)
    edge_index2 = jax.random.randint(k_e2, (2, E2), 0, N2, jnp.int32)
    out2 = jax.block_until_ready(two_layer_sage_forward(x2, edge_index2, params))
    ref2 = reference_forward(x2, edge_index2, params)
    assert out2.shape == (N2, NUM_CLASSES)
    assert jnp.allclose(out2, ref2, atol=1e-2, rtol=1e-2), \
        f"default-tile mismatch: max abs diff = {float(jnp.max(jnp.abs(out2 - ref2)))}"

    # --- same graph, small reduction tiles: exercises the multi-k accumulator with the
    #     resident operand sliced via pl.ds ---
    out3 = jax.block_until_ready(
        two_layer_sage_forward(x2, edge_index2, params, tm=128, tk=128))
    assert jnp.allclose(out3, ref2, atol=1e-2, rtol=1e-2), \
        f"multi-k mismatch: max abs diff = {float(jnp.max(jnp.abs(out3 - ref2)))}"

    # --- same graph, forced streamed (non-resident) feature operand fallback path ---
    out4 = jax.block_until_ready(
        two_layer_sage_forward(x2, edge_index2, params, tm=128, tk=128, resident_limit=0))
    assert jnp.allclose(out4, ref2, atol=1e-2, rtol=1e-2), \
        f"streamed mismatch: max abs diff = {float(jnp.max(jnp.abs(out4 - ref2)))}"

    print("KERNEL_OK")
</pallas_src>

<mosaic_0001>
module attributes {stable_mosaic.version = 11 : i64} {
  func.func @sage_layer_kernel(%arg0: i32, %arg1: i32, %arg2: memref<128x128xbf16, #tpu.memory_space<vmem>>, %arg3: memref<128x128xbf16, #tpu.memory_space<vmem>>, %arg4: memref<128x128xbf16, #tpu.memory_space<vmem>>, %arg5: memref<128x1xf32, #tpu.memory_space<vmem>>, %arg6: memref<128x128xbf16, #tpu.memory_space<vmem>>, %arg7: memref<128x128xbf16, #tpu.memory_space<vmem>>, %arg8: memref<1x128xf32, #tpu.memory_space<vmem>>, %arg9: memref<128x128xbf16, #tpu.memory_space<vmem>>, %arg10: memref<128x128xf32, #tpu.memory_space<vmem>>) attributes {dimension_semantics = [#tpu.dimension_semantics<parallel>, #tpu.dimension_semantics<arbitrary>], iteration_bounds = array<i64: 1, 1>, scalar_prefetch = 0 : i64, scratch_operands = 1 : i64, tpu.core_type = #tpu.core_type<tc>, window_params = [{transform_indices = @transform_0, window_bounds = array<i64: 128, 128>}, {pipeline_mode = #tpu.pipeline_mode<synchronous>, transform_indices = @transform_1, window_bounds = array<i64: 128, 128>}, {transform_indices = @transform_2, window_bounds = array<i64: 128, 128>}, {transform_indices = @transform_3, window_bounds = array<i64: 128, 1>}, {pipeline_mode = #tpu.pipeline_mode<synchronous>, transform_indices = @transform_4, window_bounds = array<i64: 128, 128>}, {pipeline_mode = #tpu.pipeline_mode<synchronous>, transform_indices = @transform_5, window_bounds = array<i64: 128, 128>}, {pipeline_mode = #tpu.pipeline_mode<synchronous>, transform_indices = @transform_6, window_bounds = array<i64: 1, 128>}, {transform_indices = @transform_7, window_bounds = array<i64: 128, 128>}]} {
    %c128_i32 = arith.constant 128 : i32
    %0 = arith.muli %arg1, %c128_i32 : i32
    %1 = tpu.assume_multiple %0, 128 : i32
    %2 = arith.index_cast %1 : i32 to index
    %c0 = arith.constant 0 : index
    %3 = vector.load %arg3[%2, %c0] : memref<128x128xbf16, #tpu.memory_space<vmem>>, vector<128x128xbf16>
    %c0_0 = arith.constant 0 : index
    %c0_1 = arith.constant 0 : index
    %4 = vector.load %arg2[%c0_0, %c0_1] : memref<128x128xbf16, #tpu.memory_space<vmem>>, vector<128x128xbf16>
    %cst = arith.constant dense<0.000000e+00> : vector<128x128xf32>
    %5 = tpu.matmul %4, %3, %cst {dimension_numbers = #tpu.dot_dimension_numbers<[1], [0], [0], [1], [0, 0, 1, 1], [], []>} : vector<128x128xbf16>, vector<128x128xbf16>, vector<128x128xf32> -> vector<128x128xf32>
    %c0_i32 = arith.constant 0 : i32
    %6 = arith.cmpi eq, %arg1, %c0_i32 : i32
    %7 = arith.extui %6 : i1 to i32
    %c0_i32_2 = arith.constant 0 : i32
    %8 = arith.cmpi ne, %7, %c0_i32_2 : i32
    scf.if %8 {
      %c0_7 = arith.constant 0 : index
      %c0_8 = arith.constant 0 : index
      %15 = vector.load %arg10[%c0_7, %c0_8] : memref<128x128xf32, #tpu.memory_space<vmem>>, vector<128x128xf32>
      tpu.vector_store %arg10[%c0_7, %c0_8], %5 {strides = array<i32>} : memref<128x128xf32, #tpu.memory_space<vmem>>, vector<128x128xf32>,
    } else {
    }
    %c0_i32_3 = arith.constant 0 : i32
    %9 = arith.cmpi sgt, %arg1, %c0_i32_3 : i32
    %10 = arith.extui %9 : i1 to i32
    %c0_i32_4 = arith.constant 0 : i32
    %11 = arith.cmpi ne, %10, %c0_i32_4 : i32
    scf.if %11 {
      %c0_7 = arith.constant 0 : index
      %c0_8 = arith.constant 0 : index
      %15 = vector.load %arg10[%c0_7, %c0_8] : memref<128x128xf32, #tpu.memory_space<vmem>>, vector<128x128xf32>
      %16 = arith.addf %15, %5 : vector<128x128xf32>
      %c0_9 = arith.constant 0 : index
      %c0_10 = arith.constant 0 : index
      %17 = vector.load %arg10[%c0_9, %c0_10] : memref<128x128xf32, #tpu.memory_space<vmem>>, vector<128x128xf32>
      tpu.vector_store %arg10[%c0_9, %c0_10], %16 {strides = array<i32>} : memref<128x128xf32, #tpu.memory_space<vmem>>, vector<128x128xf32>,
    } else {
    }
    %c0_i32_5 = arith.constant 0 : i32
    %12 = arith.cmpi eq, %arg1, %c0_i32_5 : i32
    %13 = arith.extui %12 : i1 to i32
    %c0_i32_6 = arith.constant 0 : i32
    %14 = arith.cmpi ne, %13, %c0_i32_6 : i32
    scf.if %14 {
      %c0_7 = arith.constant 0 : index
      %c0_8 = arith.constant 0 : index
      %15 = vector.load %arg10[%c0_7, %c0_8] : memref<128x128xf32, #tpu.memory_space<vmem>>, vector<128x128xf32>
      %c0_9 = arith.constant 0 : index
      %c0_10 = arith.constant 0 : index
      %16 = vector.load %arg5[%c0_9, %c0_10] : memref<128x1xf32, #tpu.memory_space<vmem>>, vector<128x1xf32>
      %17 = vector.broadcast %16 : vector<128x1xf32> to vector<128x128xf32>
      %18 = arith.mulf %15, %17 : vector<128x128xf32>
      %19 = arith.truncf %18 : vector<128x128xf32> to vector<128x128xbf16>
      %c0_11 = arith.constant 0 : index
      %c0_12 = arith.constant 0 : index
      %20 = vector.load %arg6[%c0_11, %c0_12] : memref<128x128xbf16, #tpu.memory_space<vmem>>, vector<128x128xbf16>
      %cst_13 = arith.constant dense<0.000000e+00> : vector<128x128xf32>
      %21 = tpu.matmul %19, %20, %cst_13 {dimension_numbers = #tpu.dot_dimension_numbers<[1], [0], [0], [1], [0, 0, 1, 1], [], []>} : vector<128x128xbf16>, vector<128x128xbf16>, vector<128x128xf32> -> vector<128x128xf32>
      %c0_14 = arith.constant 0 : index
      %c0_15 = arith.constant 0 : index
      %22 = vector.load %arg4[%c0_14, %c0_15] : memref<128x128xbf16, #tpu.memory_space<vmem>>, vector<128x128xbf16>
      %c0_16 = arith.constant 0 : index
      %c0_17 = arith.constant 0 : index
      %23 = vector.load %arg7[%c0_16, %c0_17] : memref<128x128xbf16, #tpu.memory_space<vmem>>, vector<128x128xbf16>
      %cst_18 = arith.constant dense<0.000000e+00> : vector<128x128xf32>
      %24 = tpu.matmul %22, %23, %cst_18 {dimension_numbers = #tpu.dot_dimension_numbers<[1], [0], [0], [1], [0, 0, 1, 1], [], []>} : vector<128x128xbf16>, vector<128x128xbf16>, vector<128x128xf32> -> vector<128x128xf32>
      %25 = arith.addf %21, %24 : vector<128x128xf32>
      %c0_19 = arith.constant 0 : index
      %c0_20 = arith.constant 0 : index
      %26 = vector.load %arg8[%c0_19, %c0_20] : memref<1x128xf32, #tpu.memory_space<vmem>>, vector<1x128xf32>
      %27 = vector.broadcast %26 : vector<1x128xf32> to vector<128x128xf32>
      %28 = arith.addf %25, %27 : vector<128x128xf32>
      %cst_21 = arith.constant 0.000000e+00 : f32
      %29 = vector.broadcast %cst_21 : f32 to vector<128x128xf32>
      %30 = arith.maximumf %28, %29 : vector<128x128xf32>
      %31 = arith.truncf %30 : vector<128x128xf32> to vector<128x128xbf16>
      %c0_22 = arith.constant 0 : index
      %c0_23 = arith.constant 0 : index
      %32 = vector.load %arg9[%c0_22, %c0_23] : memref<128x128xbf16, #tpu.memory_space<vmem>>, vector<128x128xbf16>
      tpu.vector_store %arg9[%c0_22, %c0_23], %31 {strides = array<i32>} : memref<128x128xbf16, #tpu.memory_space<vmem>>, vector<128x128xbf16>,
    } else {
    }
    return
  }
  func.func @transform_0(%arg0: i32, %arg1: i32) -> (i32, i32) {
    %c0_i32 = arith.constant 0 : i32
    return %arg0, %arg1 : i32, i32
  }
  func.func @transform_1(%arg0: i32, %arg1: i32) -> (i32, i32) {
    %c0_i32 = arith.constant 0 : i32
    %c0_i32_0 = arith.constant 0 : i32
    %c0_i32_1 = arith.constant 0 : i32
    return %c0_i32, %c0_i32_0 : i32, i32
  }
  func.func @transform_2(%arg0: i32, %arg1: i32) -> (i32, i32) {
    %c0_i32 = arith.constant 0 : i32
    %c0_i32_0 = arith.constant 0 : i32
    return %arg0, %c0_i32 : i32, i32
  }
  func.func @transform_3(%arg0: i32, %arg1: i32) -> (i32, i32) {
    %c0_i32 = arith.constant 0 : i32
    %c0_i32_0 = arith.constant 0 : i32
    return %arg0, %c0_i32 : i32, i32
  }
  func.func @transform_4(%arg0: i32, %arg1: i32) -> (i32, i32) {
    %c0_i32 = arith.constant 0 : i32
    %c0_i32_0 = arith.constant 0 : i32
    %c0_i32_1 = arith.constant 0 : i32
    return %c0_i32, %c0_i32_0 : i32, i32
  }
  func.func @transform_5(%arg0: i32, %arg1: i32) -> (i32, i32) {
    %c0_i32 = arith.constant 0 : i32
    %c0_i32_0 = arith.constant 0 : i32
    %c0_i32_1 = arith.constant 0 : i32
    return %c0_i32, %c0_i32_0 : i32, i32
  }
  func.func @transform_6(%arg0: i32, %arg1: i32) -> (i32, i32) {
    %c0_i32 = arith.constant 0 : i32
    %c0_i32_0 = arith.constant 0 : i32
    %c0_i32_1 = arith.constant 0 : i32
    return %c0_i32, %c0_i32_0 : i32, i32
  }
  func.func @transform_7(%arg0: i32, %arg1: i32) -> (i32, i32) {
    %c0_i32 = arith.constant 0 : i32
    %c0_i32_0 = arith.constant 0 : i32
    return %arg0, %c0_i32 : i32, i32
  }
}

</mosaic_0001>

<bundles_post_ra>
// kernel: tpu_custom_call.1
= control target key start
LH: loop header
LB: loop body
LE: loop exit
PB: predicated region body
PF: predicated region fallthrough
CT: control target
= control target key end

     0   :  { %12 = vsyncpa [#allocation4], 0  ;;  %s1711_s0 = inlined_call_operand.vmem [shape: bf16[128,128], index: 0, kind: input, shape index: {}]   ;;  %s1712_s1 = inlined_call_operand.vmem [shape: bf16[128,128], index: 1, kind: input, shape index: {}]   ;;  %s1713_s2 = inlined_call_operand.hbm [shape: bf16[128,128], index: 2, kind: input, shape index: {}]   ;;  %s1714_s3 = inlined_call_operand.vmem [shape: f32[128,1], index: 3, kind: input, shape index: {}]   ;;  %s1715_s4 = inlined_call_operand.hbm [shape: bf16[128,128], index: 4, kind: input, shape index: {}]   ;;  %s1716_s5 = inlined_call_operand.hbm [shape: bf16[128,128], index: 5, kind: input, shape index: {}]   ;;  %s1717_s6 = inlined_call_operand.vmem [shape: f32[1,128], index: 6, kind: input, shape index: {}]   ;;  %s1718_s7 = inlined_call_operand.hbm [shape: bf16[128,128], index: 7, kind: output, shape index: {}]  }
   0x1   :  { %13 = vsyncpa [#allocation7], 0 }
   0x2   :  { %14 = vsyncpa [#allocation5], 0  ;;  %s1474_s24 = smov [#allocation6]   ;;  %s1475_s26 = smov [#allocation3]  }
   0x3   :  { %s38_s25 = sshll.u32 %s1474_s24, 4  ;;  %s24_s27 = sshll.u32 %s1475_s26, 4  ;;  %s39_s25 = int_to_ptr.vmem [resolvable:$true] %s38_s25  ;;  %s1521_s27 = int_to_ptr.vmem [resolvable:$true] %s24_s27 }
   0x4   :  { %s1380_s30 = scalar_lea.hbm %s1715_s4, 1024 }
   0x5   :  { %p1381_p0 = scmp.ne.s32.totalorder %s1715_s4, %s1380_s30  ;;  %p1384_p1 = scmp.lt.u32.totalorder %s1380_s30, %s1715_s4 }
   0x7   :  { %p1386_p2 = pnand %p1384_p1, %p1381_p0 }
   0x9   :  { %1389 = shalt.err (!%p1386_p2)
}
   0xa   :  { %s1390_s12 = scalar_lea.vmem %s39_s25, 1024  ;;  %p1395_p4 = scmp.lt.s32.totalorder %s39_s25, %s39_s25 }
   0xb   :  { %p1391_p3 = scmp.ne.s32.totalorder %s39_s25, %s1390_s12  ;;  %p1396_p5 = scmp.lt.s32.totalorder %s1390_s12, %s1390_s12 }
   0xd   :  { %p1397_p6 = por %p1396_p5, %p1395_p4 }
   0xf   :  { %p1398_p7 = pnand %p1397_p6, %p1391_p3 }
  0x11   :  { %1401 = shalt.err (!%p1398_p7)
}
  0x12   :  { %s1476_s13 = smov 64   ;;  %s1477_s14 = smov 4  }
  0x13   :  { %44 = dma.hbm_to_vmem [thread:$0]  %s1715_s4, 1024, %s39_s25, [#allocation7], %s1476_s13, %s1476_s13, %s1477_s14  }
  0x14   :  { %s1402_s19 = scalar_lea.hbm %s1713_s2, 1024 }
  0x15   :  { %p1403_p8 = scmp.ne.s32.totalorder %s1713_s2, %s1402_s19  ;;  %p1406_p9 = scmp.lt.u32.totalorder %s1402_s19, %s1713_s2 }
  0x17   :  { %p1408_p10 = pnand %p1406_p9, %p1403_p8 }
  0x19   :  { %1411 = shalt.err (!%p1408_p10)
}
  0x1a   :  { %s1412_s24 = scalar_lea.vmem %s1521_s27, 1024  ;;  %p1417_p12 = scmp.lt.s32.totalorder %s1521_s27, %s1521_s27 }
  0x1b   :  { %p1413_p11 = scmp.ne.s32.totalorder %s1521_s27, %s1412_s24  ;;  %p1418_p13 = scmp.lt.s32.totalorder %s1412_s24, %s1412_s24 }
  0x1d   :  { %p1419_p0 = por %p1418_p13, %p1417_p12 }
  0x1f   :  { %p1420_p1 = pnand %p1419_p0, %p1413_p11 }
  0x21   :  { %1423 = shalt.err (!%p1420_p1)
}
  0x22   :  { %30 = dma.hbm_to_vmem [thread:$0]  %s1713_s2, 1024, %s1521_s27, [#allocation4], %s1476_s13, %s1476_s13, %s1477_s14  }
  0x23   :  { %s1478_s26 = smov [#allocation8]   ;;  %s1424_s8 = scalar_lea.hbm %s1716_s5, 1024 }
  0x24   :  { %s50_s28 = sshll.u32 %s1478_s26, 4  ;;  %p1425_p2 = scmp.ne.s32.totalorder %s1716_s5, %s1424_s8  ;;  %s51_s28 = int_to_ptr.vmem [resolvable:$true] %s50_s28 }
  0x25   :  { %p1428_p3 = scmp.lt.u32.totalorder %s1424_s8, %s1716_s5 }
  0x27   :  { %p1430_p4 = pnand %p1428_p3, %p1425_p2 }
  0x29   :  { %1433 = shalt.err (!%p1430_p4)
}
  0x2a   :  { %s1434_s15 = scalar_lea.vmem %s51_s28, 1024  ;;  %p1439_p6 = scmp.lt.s32.totalorder %s51_s28, %s51_s28 }
  0x2b   :  { %p1435_p5 = scmp.ne.s32.totalorder %s51_s28, %s1434_s15  ;;  %p1440_p7 = scmp.lt.s32.totalorder %s1434_s15, %s1434_s15 }
  0x2d   :  { %p1441_p8 = por %p1440_p7, %p1439_p6 }
  0x2f   :  { %p1442_p9 = pnand %p1441_p8, %p1435_p5 }
  0x31   :  { %1445 = shalt.err (!%p1442_p9)
}
  0x32   :  { %56 = dma.hbm_to_vmem [thread:$0]  %s1716_s5, 1024, %s51_s28, [#allocation7], %s1476_s13, %s1476_s13, %s1477_s14  }
  0x33   :  { %1468 = dma.done.wait [#allocation4], 1024  }
  0x34   :  { %1469 = vsyncadd [#allocation4], 4294966272 }
  0x35   :  { %1470 = dma.done.wait [#allocation7], 2048  }
  0x36   :  { %1471 = vsyncadd [#allocation7], 4294965248  ;;  %v1479_v0 = vmov 0   ;;  %v1340_v1 = vld [vmem:[%s1712_s1] sm:$0xff]   ;;  %v1341_v2 = vld [vmem:[%s1712_s1 + $0x8] sm:$0xff]  }
  0x37   :  { %1339 = vset.pattern.permute.xlu1 %v1479_v0  ;;  %1338 = vset.pattern.permute.xlu0 %v1479_v0  ;;  %v1342_v3 = vld [vmem:[%s1712_s1 + $0x10] sm:$0xff]   ;;  %v1343_v4 = vld [vmem:[%s1712_s1 + $0x18] sm:$0xff]   ;;  %v1348_v5 = vld [vmem:[%s1711_s0] sm:$0xff]  }
  0x38   :  { %1203 = vmatprep.subr.bf16.mxu0 %v1340_v1  ;;  %1219 = vmatprep.mubr.bf16.mxu0 %v1348_v5  ;;  %v1344_v6 = vld [vmem:[%s1712_s1 + $0x20] sm:$0xff]   ;;  %v1345_v7 = vld [vmem:[%s1712_s1 + $0x28] sm:$0xff]   ;;  %v392_v8 = vld [vmem:[%s1714_s3 + $0x10] sm:$0xff] }
  0x39   :  { %1204 = vmatpush3.bf16.msra.mxu0 %v1340_v1  ;;  %v390_v9 = vld [vmem:[%s1714_s3] sm:$0xff]  ;;  %418 = vperm.xlu1 %1339, %v392_v8   ;;  %v393_v10 = vld [vmem:[%s1714_s3 + $0x18] sm:$0xff]  ;;  %v391_v11 = vld [vmem:[%s1714_s3 + $0x8] sm:$0xff] }
  0x3a   :  { %1205 = vmatprep.subr.bf16.mxu0 %v1341_v2  ;;  %408 = vperm.xlu0 %1338, %v390_v9   ;;  %v1346_v12 = vld [vmem:[%s1712_s1 + $0x30] sm:$0xff]   ;;  %v399_v13 = vld [vmem:[%s1714_s3 + $0x48] sm:$0xff]  ;;  %v398_v14 = vld [vmem:[%s1714_s3 + $0x40] sm:$0xff] }
  0x3b   :  { %v1356_v15 = vld [vmem:[#allocation8] sm:$0xff]   ;;  %v1357_v16 = vld [vmem:[#allocation8 + $0x8] sm:$0xff]   ;;  %v1347_v17 = vld [vmem:[%s1712_s1 + $0x38] sm:$0xff]  }
  0x3c   :  { %1235 = vmatprep.subr.bf16.mxu1 %v1356_v15  ;;  %v401_v18 = vld [vmem:[%s1714_s3 + $0x58] sm:$0xff]  ;;  %v400_v19 = vld [vmem:[%s1714_s3 + $0x50] sm:$0xff]  ;;  %v1349_v21 = vld [vmem:[%s1711_s0 + $0x8] sm:$0xff]  }
  0x3d   :  { %1206 = vmatpush3.bf16.msra.mxu0 %v1341_v2  ;;  %423 = vperm.xlu1 %1339, %v393_v10   ;;  %v1358_v20 = vld [vmem:[#allocation8 + $0x10] sm:$0xff]   ;;  %v1627_v22 = vld [vmem:[#allocation6] sm:$0xff]   ;;  %v395_v24 = vld [vmem:[%s1714_s3 + $0x28] sm:$0xff] }
  0x3e   :  { %1207 = vmatprep.subr.bf16.mxu0 %v1342_v3  ;;  %413 = vperm.xlu0 %1338, %v391_v11   ;;  %v1350_v23 = vld [vmem:[%s1711_s0 + $0x10] sm:$0xff]   ;;  %v394_v25 = vld [vmem:[%s1714_s3 + $0x20] sm:$0xff]  ;;  %v1359_v26 = vld [vmem:[#allocation8 + $0x18] sm:$0xff]  }
  0x3f   :  { %1236 = vmatpush3.bf16.msra.mxu1 %v1356_v15  ;;  %v397_v27 = vld [vmem:[%s1714_s3 + $0x38] sm:$0xff]  ;;  %v396_v28 = vld [vmem:[%s1714_s3 + $0x30] sm:$0xff]  ;;  %v1367_v29 = vld [vmem:[#allocation3] sm:$0xff]  }
  0x40   :  { %1237 = vmatprep.subr.bf16.mxu1 %v1357_v16  ;;  %v1363_v30 = vld [vmem:[#allocation6 + $0x8] sm:$0xff]   ;;  %v1360_v31 = vld [vmem:[#allocation8 + $0x20] sm:$0xff]   ;;  %v1351_v32 = vld [vmem:[%s1711_s0 + $0x18] sm:$0xff]   ;;  %1251 = vmatprep.mubr.bf16.mxu1 %v1367_v29 }
  0x41   :  { %1208 = vmatpush3.bf16.msra.mxu0 %v1342_v3  ;;  %453 = vperm.xlu1 %1339, %v399_v13   ;;  %v403_v33 = vld [vmem:[%s1714_s3 + $0x68] sm:$0xff]  ;;  %v402_v34 = vld [vmem:[%s1714_s3 + $0x60] sm:$0xff]  ;;  %v405_v37 = vld [vmem:[%s1714_s3 + $0x78] sm:$0xff] }
  0x42   :  { %1209 = vmatprep.subr.bf16.mxu0 %v1343_v4  ;;  %448 = vperm.xlu0 %1338, %v398_v14   ;;  %v1352_v35 = vld [vmem:[%s1711_s0 + $0x20] sm:$0xff]   ;;  %v1362_v36 = vld [vmem:[#allocation8 + $0x28] sm:$0xff]   ;;  %v404_v38 = vld [vmem:[%s1714_s3 + $0x70] sm:$0xff] }
  0x43   :  { %1238 = vmatpush3.bf16.msra.mxu1 %v1357_v16  ;;  %v1365_v39 = vld [vmem:[#allocation6 + $0x10] sm:$0xff]   ;;  %v1368_v41 = vld [vmem:[#allocation6 + $0x18] sm:$0xff]   ;;  %v1353_v42 = vld [vmem:[%s1711_s0 + $0x28] sm:$0xff]  }
  0x44   :  { %1239 = vmatprep.subr.bf16.mxu1 %v1358_v20  ;;  %v1364_v40 = vld [vmem:[#allocation8 + $0x30] sm:$0xff]   ;;  %v1366_v44 = vld [vmem:[#allocation8 + $0x38] sm:$0xff]   ;;  %v1370_v45 = vld [vmem:[#allocation6 + $0x20] sm:$0xff]  }
  0x45   :  { %1210 = vmatpush3.bf16.msra.mxu0 %v1343_v4  ;;  %463 = vperm.xlu1 %1339, %v401_v18   ;;  %v1354_v43 = vld [vmem:[%s1711_s0 + $0x30] sm:$0xff]   ;;  %v1369_v46 = vld [vmem:[#allocation3 + $0x8] sm:$0xff]   ;;  %v1355_v48 = vld [vmem:[%s1711_s0 + $0x38] sm:$0xff]  }
  0x46   :  { %1211 = vmatprep.subr.bf16.mxu0 %v1344_v6  ;;  %458 = vperm.xlu0 %1338, %v400_v19   ;;  %v1372_v47 = vld [vmem:[#allocation6 + $0x28] sm:$0xff]   ;;  %v1371_v49 = vld [vmem:[#allocation3 + $0x10] sm:$0xff]   ;;  %v1373_v50 = vld [vmem:[#allocation3 + $0x18] sm:$0xff]  }
  0x47   :  { %1240 = vmatpush3.bf16.msra.mxu1 %v1358_v20  ;;  %v1374_v51 = vld [vmem:[#allocation6 + $0x30] sm:$0xff]   ;;  %v1375_v52 = vld [vmem:[#allocation6 + $0x38] sm:$0xff]   ;;  %v1376_v53 = vld [vmem:[#allocation3 + $0x20] sm:$0xff]  }
  0x48   :  { %1241 = vmatprep.subr.bf16.mxu1 %v1359_v26  ;;  %v1377_v54 = vld [vmem:[#allocation3 + $0x28] sm:$0xff]   ;;  %v1378_v55 = vld [vmem:[#allocation3 + $0x30] sm:$0xff]   ;;  %v1379_v56 = vld [vmem:[#allocation3 + $0x38] sm:$0xff]  }
  0x49   :  { %1212 = vmatpush3.bf16.msra.mxu0 %v1344_v6  ;;  %433 = vperm.xlu1 %1339, %v395_v24  }
  0x4a   :  { %1213 = vmatprep.subr.bf16.mxu0 %v1345_v7  ;;  %428 = vperm.xlu0 %1338, %v394_v25  }
  0x4b   :  { %1242 = vmatpush3.bf16.msra.mxu1 %v1359_v26 }
  0x4c   :  { %1243 = vmatprep.subr.bf16.mxu1 %v1360_v31 }
  0x4d   :  { %1214 = vmatpush3.bf16.msra.mxu0 %v1345_v7  ;;  %443 = vperm.xlu1 %1339, %v397_v27  }
  0x4e   :  { %1215 = vmatprep.subr.bf16.mxu0 %v1346_v12  ;;  %438 = vperm.xlu0 %1338, %v396_v28  }
  0x4f   :  { %1244 = vmatpush3.bf16.msra.mxu1 %v1360_v31 }
  0x50   :  { %1245 = vmatprep.subr.bf16.mxu1 %v1362_v36 }
  0x51   :  { %1216 = vmatpush3.bf16.msra.mxu0 %v1346_v12  ;;  %473 = vperm.xlu1 %1339, %v403_v33  }
  0x52   :  { %1217 = vmatprep.subr.bf16.mxu0 %v1347_v17  ;;  %468 = vperm.xlu0 %1338, %v402_v34  }
  0x53   :  { %1246 = vmatpush3.bf16.msra.mxu1 %v1362_v36 }
  0x54   :  { %1247 = vmatprep.subr.bf16.mxu1 %v1364_v40 }
  0x55   :  { %1218 = vmatpush3.bf16.msra.mxu0 %v1347_v17  ;;  %483 = vperm.xlu1 %1339, %v405_v37  }
  0x56   :  { %1267 = vmatprep.subr.bf16.mxu0 %v1627_v22  ;;  %478 = vperm.xlu0 %1338, %v404_v38  }
  0x57   :  { %1248 = vmatpush3.bf16.msra.mxu1 %v1364_v40 }
  0x58   :  { %1220 = vmatmul.mubr.bf16.vlgmr.msra.gmra.mrb[0].mxu0 %v1349_v21  ;;  %1249 = vmatprep.subr.bf16.mxu1 %v1366_v44 }
  0x59   :  { %1223 = vmatprep.mubr.bf16.mxu0 %v1350_v23  ;;  %1268 = vmatpush3.bf16.msra.mxu0 %v1627_v22 }
  0x5a   :  { %1269 = vmatprep.subr.bf16.mxu0 %v1363_v30 }
  0x5b   :  { %1250 = vmatpush3.bf16.msra.mxu1 %v1366_v44 }
  0x5c   :  { %1299 = vmatprep.subr.bf16.mxu1 %v1627_v22 }
  0x5d   :  { %1270 = vmatpush3.bf16.msra.mxu0 %v1363_v30 }
  0x5e   :  { %1271 = vmatprep.subr.bf16.mxu0 %v1365_v39  ;;  %1252 = vmatmul.mubr.bf16.vlgmr.msra.gmra.mrb[0].mxu1 %v1369_v46 }
  0x5f   :  { %1307 = vmatpush3.bf16.msra.mxu1 %v1627_v22  ;;  %1255 = vmatprep.mubr.bf16.mxu1 %v1371_v49 }
  0x60   :  { %1224 = vmatmul.mubr.bf16.gmra.mrb[4].mxu0 %v1351_v32  ;;  %1300 = vmatprep.subr.bf16.mxu1 %v1363_v30 }
  0x61   :  { %1227 = vmatprep.mubr.bf16.mxu0 %v1352_v35  ;;  %1272 = vmatpush3.bf16.msra.mxu0 %v1365_v39 }
  0x62   :  { %1273 = vmatprep.subr.bf16.mxu0 %v1368_v41 }
  0x63   :  { %1308 = vmatpush3.bf16.msra.mxu1 %v1363_v30 }
  0x64   :  { %1301 = vmatprep.subr.bf16.mxu1 %v1365_v39 }
  0x65   :  { %1274 = vmatpush3.bf16.msra.mxu0 %v1368_v41 }
  0x66   :  { %1275 = vmatprep.subr.bf16.mxu0 %v1370_v45  ;;  %1256 = vmatmul.mubr.bf16.gmra.mrb[4].mxu1 %v1373_v50 }
  0x67   :  { %1309 = vmatpush3.bf16.msra.mxu1 %v1365_v39  ;;  %1259 = vmatprep.mubr.bf16.mxu1 %v1376_v53 }
  0x68   :  { %1228 = vmatmul.mubr.bf16.gmra.mrb[8].mxu0 %v1353_v42  ;;  %1302 = vmatprep.subr.bf16.mxu1 %v1368_v41 }
  0x69   :  { %1231 = vmatprep.mubr.bf16.mxu0 %v1354_v43  ;;  %1276 = vmatpush3.bf16.msra.mxu0 %v1370_v45 }
  0x6a   :  { %1277 = vmatprep.subr.bf16.mxu0 %v1372_v47 }
  0x6b   :  { %1310 = vmatpush3.bf16.msra.mxu1 %v1368_v41 }
  0x6c   :  { %1303 = vmatprep.subr.bf16.mxu1 %v1370_v45 }
  0x6d   :  { %1278 = vmatpush3.bf16.msra.mxu0 %v1372_v47 }
  0x6e   :  { %1279 = vmatprep.subr.bf16.mxu0 %v1374_v51  ;;  %1260 = vmatmul.mubr.bf16.gmra.mrb[8].mxu1 %v1377_v54 }
  0x6f   :  { %1311 = vmatpush3.bf16.msra.mxu1 %v1370_v45  ;;  %1263 = vmatprep.mubr.bf16.mxu1 %v1378_v55 }
  0x70   :  { %1232 = vmatmul.mubr.bf16.gmra.mrb[12].mxu0 %v1355_v48  ;;  %1304 = vmatprep.subr.bf16.mxu1 %v1372_v47 }
  0x71   :  { %1280 = vmatpush3.bf16.msra.mxu0 %v1374_v51 }
  0x72   :  { %1281 = vmatprep.subr.bf16.mxu0 %v1375_v52 }
  0x73   :  { %1312 = vmatpush3.bf16.msra.mxu1 %v1372_v47 }
  0x74   :  { %1305 = vmatprep.subr.bf16.mxu1 %v1374_v51 }
  0x75   :  { %1282 = vmatpush3.bf16.msra.mxu0 %v1375_v52 }
  0x76   :  { %1264 = vmatmul.mubr.bf16.gmra.mrb[12].mxu1 %v1379_v56 }
  0x77   :  { %1313 = vmatpush3.bf16.msra.mxu1 %v1374_v51 }
  0x78   :  { %1306 = vmatprep.subr.bf16.mxu1 %v1375_v52 }
  0x7b   :  { %1314 = vmatpush3.bf16.msra.mxu1 %v1375_v52 }
  0xb8   :  { %v419_v57 = vpop.permute.xlu1 %418 }
  0xb9   :  { %v409_v58 = vpop.permute.xlu0 %408 }
  0xbc   :  { %v424_v59 = vpop.permute.xlu1 %423 }
  0xbd   :  { %v414_v60 = vpop.permute.xlu0 %413 }
  0xc0   :  { %v454_v61 = vpop.permute.xlu1 %453 }
  0xc1   :  { %v449_v62 = vpop.permute.xlu0 %448 }
  0xc4   :  { %v464_v63 = vpop.permute.xlu1 %463 }
  0xc5   :  { %v459_v0 = vpop.permute.xlu0 %458 }
  0xc8   :  { %v434_v4 = vpop.permute.xlu1 %433 }
  0xc9   :  { %v429_v8 = vpop.permute.xlu0 %428 }
  0xcc   :  { %v444_v14 = vpop.permute.xlu1 %443 }
  0xcd   :  { %v439_v16 = vpop.permute.xlu0 %438 }
  0xd0   :  { %v474_v25 = vpop.permute.xlu1 %473 }
  0xd1   :  { %v469_v27 = vpop.permute.xlu0 %468 }
  0xd4   :  { %v484_v36 = vpop.permute.xlu1 %483 }
  0xd5   :  { %v479_v38 = vpop.permute.xlu0 %478 }
 0x12b   :  { %v1221_v1 = vpop.f32.mrb[0].mxu0 }
 0x12c   :  { %v236_v2 = vpop.f32.mrb[1].mxu0  ;;  %v488_v5 = vmul.f32 %v1221_v1, %v419_v57 }
 0x12d   :  { %v1222_v3 = vpop.f32.mrb[2].mxu0  ;;  %v486_v9 = vmul.f32 %v409_v58, %v236_v2  ;;  %v1678_v58 = vld [vmem:[%s1717_s6] ss:$0 sm:$0xff]  ;;  %s1480_s6 = smov [#allocation9]  }
 0x12e   :  { %v489_v6 = vmul.f32 %v1222_v3, %v424_v59  ;;  %v239_v7 = vpop.f32.mrb[3].mxu0  ;;  %s1020_s29 = sshll.u32 %s1480_s6, 4  ;;  %s1021_s29 = int_to_ptr.vmem [resolvable:$true] %s1020_s29 }
 0x12f   :  { %v487_v10 = vmul.f32 %v414_v60, %v239_v7  ;;  %s1446_s30 = scalar_lea.vmem %s1021_s29, 1024  ;;  %p1451_p11 = scmp.lt.s32.totalorder %s1021_s29, %s1021_s29 }
 0x130   :  { %v503_v11 = vpack.c.bf16 %v489_v6, %v488_v5  ;;  %p1447_p10 = scmp.ne.s32.totalorder %s1021_s29, %s1446_s30  ;;  %p1452_p12 = scmp.lt.s32.totalorder %s1446_s30, %s1446_s30 }
 0x131   :  { %v502_v12 = vpack.c.bf16 %v487_v10, %v486_v9  ;;  %v1253_v39 = vpop.f32.mrb[0].mxu1 }
 0x132   :  { %v688_v41 = vpop.f32.mrb[1].mxu1  ;;  %p1453_p13 = por %p1452_p12, %p1451_p11 }
 0x133   :  { %v1225_v13 = vpop.f32.mrb[4].mxu0  ;;  %1283 = vmatprep.mubr.bf16.mxu0 %v502_v12  ;;  %v1254_v43 = vpop.f32.mrb[2].mxu1 }
 0x134   :  { %v252_v15 = vpop.f32.mrb[5].mxu0  ;;  %1284 = vmatmul.mubr.bf16.vlgmr.msra.gmra.mrb[16].mxu0 %v503_v11  ;;  %v492_v18 = vmul.f32 %v1225_v13, %v439_v16  ;;  %v691_v45 = vpop.f32.mrb[3].mxu1  ;;  %p1454_p0 = pnand %p1453_p13, %p1447_p10 }
 0x135   :  { %v1226_v17 = vpop.f32.mrb[6].mxu0  ;;  %v490_v21 = vmul.f32 %v429_v8, %v252_v15 }
 0x136   :  { %v493_v19 = vmul.f32 %v1226_v17, %v444_v14  ;;  %v255_v20 = vpop.f32.mrb[7].mxu0 }
 0x137   :  { %v491_v22 = vmul.f32 %v434_v4, %v255_v20 }
 0x138   :  { %v505_v23 = vpack.c.bf16 %v493_v19, %v492_v18 }
 0x139   :  { %v504_v24 = vpack.c.bf16 %v491_v22, %v490_v21  ;;  %v1257_v53 = vpop.f32.mrb[4].mxu1 }
 0x13a   :  { %v704_v54 = vpop.f32.mrb[5].mxu1 }
 0x13b   :  { %v1229_v26 = vpop.f32.mrb[8].mxu0  ;;  %1287 = vmatprep.mubr.bf16.mxu0 %v504_v24  ;;  %v1258_v55 = vpop.f32.mrb[6].mxu1 }
 0x13c   :  { %v268_v28 = vpop.f32.mrb[9].mxu0  ;;  %1288 = vmatmul.mubr.bf16.gmra.mrb[20].mxu0 %v505_v23  ;;  %v496_v30 = vmul.f32 %v1229_v26, %v459_v0  ;;  %v707_v56 = vpop.f32.mrb[7].mxu1 }
 0x13d   :  { %v1230_v29 = vpop.f32.mrb[10].mxu0  ;;  %v494_v33 = vmul.f32 %v449_v62, %v268_v28 }
 0x13e   :  { %v497_v31 = vmul.f32 %v1230_v29, %v464_v63  ;;  %v271_v32 = vpop.f32.mrb[11].mxu0 }
 0x13f   :  { %v495_v34 = vmul.f32 %v454_v61, %v271_v32 }
 0x140   :  { %v507_v35 = vpack.c.bf16 %v497_v31, %v496_v30 }
 0x141   :  { %v506_v37 = vpack.c.bf16 %v495_v34, %v494_v33 }
 0x143   :  { %v1233_v40 = vpop.f32.mrb[12].mxu0  ;;  %1291 = vmatprep.mubr.bf16.mxu1 %v506_v37 }
 0x144   :  { %v284_v42 = vpop.f32.mrb[13].mxu0  ;;  %1292 = vmatmul.mubr.bf16.vlgmr.msra.gmra.mrb[8].mxu1 %v507_v35  ;;  %v500_v46 = vmul.f32 %v1233_v40, %v479_v38 }
 0x145   :  { %v1234_v44 = vpop.f32.mrb[14].mxu0  ;;  %v498_v49 = vmul.f32 %v469_v27, %v284_v42 }
 0x146   :  { %v501_v47 = vmul.f32 %v1234_v44, %v484_v36  ;;  %v287_v48 = vpop.f32.mrb[15].mxu0 }
 0x147   :  { %v499_v50 = vmul.f32 %v474_v25, %v287_v48 }
 0x148   :  { %v509_v51 = vpack.c.bf16 %v501_v47, %v500_v46 }
 0x149   :  { %v508_v52 = vpack.c.bf16 %v499_v50, %v498_v49 }
 0x14b   :  { %1295 = vmatprep.mubr.bf16.mxu1 %v508_v52 }
 0x14c   :  { %1296 = vmatmul.mubr.bf16.gmra.mrb[12].mxu1 %v509_v51 }
 0x207   :  { %v1285_v57 = vpop.f32.mrb[16].mxu0 }
 0x208   :  { %v842_v59 = vadd.f32 %v1285_v57, %v1253_v39  ;;  %v833_v60 = vpop.f32.mrb[17].mxu0 }
 0x209   :  { %v834_v61 = vadd.f32 %v833_v60, %v688_v41  ;;  %v1286_v62 = vpop.f32.mrb[18].mxu0 }
 0x20a   :  { %v905_v63 = vadd.f32 %v1678_v58, %v842_v59  ;;  %v845_v0 = vadd.f32 %v1286_v62, %v1254_v43  ;;  %v836_v1 = vpop.f32.mrb[19].mxu0 }
 0x20b   :  { %v903_v2 = vadd.f32 %v1678_v58, %v834_v61  ;;  %v837_v3 = vadd.f32 %v836_v1, %v691_v45 }
 0x20c   :  { %v906_v4 = vadd.f32 %v1678_v58, %v845_v0  ;;  %v921_v6 = vmax.f32 %v905_v63, 0.0 }
 0x20d   :  { %v904_v5 = vadd.f32 %v1678_v58, %v837_v3  ;;  %v919_v8 = vmax.f32 %v903_v2, 0.0 }
 0x20e   :  { %v922_v7 = vmax.f32 %v906_v4, 0.0 }
 0x20f   :  { %v920_v9 = vmax.f32 %v904_v5, 0.0  ;;  %v1289_v10 = vpop.f32.mrb[20].mxu0 }
 0x210   :  { %v1116_v11 = vpack.c.bf16 %v922_v7, %v921_v6  ;;  %v858_v12 = vadd.f32 %v1289_v10, %v1257_v53  ;;  %v849_v13 = vpop.f32.mrb[21].mxu0 }
 0x211   :  { %v1111_v14 = vpack.c.bf16 %v920_v9, %v919_v8  ;;  %v850_v15 = vadd.f32 %v849_v13, %v704_v54  ;;  %v1290_v16 = vpop.f32.mrb[22].mxu0 }
 0x212   :  { %1148 = vst [vmem:[#allocation9 + $0x8] sm:$0xff] %v1116_v11   ;;  %v909_v17 = vadd.f32 %v1678_v58, %v858_v12  ;;  %v861_v18 = vadd.f32 %v1290_v16, %v1258_v55  ;;  %v852_v19 = vpop.f32.mrb[23].mxu0 }
 0x213   :  { %1112 = vst [vmem:[#allocation9] sm:$0xff] %v1111_v14   ;;  %v907_v20 = vadd.f32 %v1678_v58, %v850_v15  ;;  %v853_v21 = vadd.f32 %v852_v19, %v707_v56 }
 0x214   :  { %v910_v22 = vadd.f32 %v1678_v58, %v861_v18  ;;  %v925_v24 = vmax.f32 %v909_v17, 0.0 }
 0x215   :  { %v908_v23 = vadd.f32 %v1678_v58, %v853_v21  ;;  %v923_v26 = vmax.f32 %v907_v20, 0.0 }
 0x216   :  { %v926_v25 = vmax.f32 %v910_v22, 0.0 }
 0x217   :  { %v924_v27 = vmax.f32 %v908_v23, 0.0  ;;  %v1293_v28 = vpop.f32.mrb[8].mxu1 }
 0x218   :  { %v1126_v29 = vpack.c.bf16 %v926_v25, %v925_v24  ;;  %v913_v30 = vadd.f32 %v1293_v28, %v1678_v58  ;;  %v865_v31 = vpop.f32.mrb[9].mxu1 }
 0x219   :  { %v1121_v32 = vpack.c.bf16 %v924_v27, %v923_v26  ;;  %v911_v33 = vadd.f32 %v1678_v58, %v865_v31  ;;  %v1294_v34 = vpop.f32.mrb[10].mxu1 }
 0x21a   :  { %1150 = vst [vmem:[#allocation9 + $0x18] sm:$0xff] %v1126_v29   ;;  %v914_v35 = vadd.f32 %v1294_v34, %v1678_v58  ;;  %v868_v36 = vpop.f32.mrb[11].mxu1  ;;  %v929_v38 = vmax.f32 %v913_v30, 0.0 }
 0x21b   :  { %1149 = vst [vmem:[#allocation9 + $0x10] sm:$0xff] %v1121_v32   ;;  %v912_v37 = vadd.f32 %v1678_v58, %v868_v36  ;;  %v927_v40 = vmax.f32 %v911_v33, 0.0 }
 0x21c   :  { %v930_v39 = vmax.f32 %v914_v35, 0.0 }
 0x21d   :  { %v928_v41 = vmax.f32 %v912_v37, 0.0 }
 0x21e   :  { %v1136_v42 = vpack.c.bf16 %v930_v39, %v929_v38 }
 0x21f   :  { %v1131_v43 = vpack.c.bf16 %v928_v41, %v927_v40  ;;  %v1297_v44 = vpop.f32.mrb[12].mxu1 }
 0x220   :  { %1152 = vst [vmem:[#allocation9 + $0x28] sm:$0xff] %v1136_v42   ;;  %v917_v45 = vadd.f32 %v1297_v44, %v1678_v58  ;;  %v881_v46 = vpop.f32.mrb[13].mxu1 }
 0x221   :  { %1151 = vst [vmem:[#allocation9 + $0x20] sm:$0xff] %v1131_v43   ;;  %v915_v47 = vadd.f32 %v1678_v58, %v881_v46  ;;  %v1298_v48 = vpop.f32.mrb[14].mxu1 }
 0x222   :  { %v918_v49 = vadd.f32 %v1298_v48, %v1678_v58  ;;  %v884_v50 = vpop.f32.mrb[15].mxu1  ;;  %v933_v52 = vmax.f32 %v917_v45, 0.0 }
 0x223   :  { %v916_v51 = vadd.f32 %v1678_v58, %v884_v50  ;;  %v931_v54 = vmax.f32 %v915_v47, 0.0 }
 0x224   :  { %v934_v53 = vmax.f32 %v918_v49, 0.0 }
 0x225   :  { %v932_v55 = vmax.f32 %v916_v51, 0.0 }
 0x226   :  { %v1146_v56 = vpack.c.bf16 %v934_v53, %v933_v52 }
 0x227   :  { %v1141_v57 = vpack.c.bf16 %v932_v55, %v931_v54 }
 0x228   :  { %1154 = vst [vmem:[#allocation9 + $0x38] sm:$0xff] %v1146_v56  }
 0x229   :  { %1153 = vst [vmem:[#allocation9 + $0x30] sm:$0xff] %v1141_v57  }
 0x22a   :  { %1457 = shalt.err (!%p1454_p0)
}
 0x22b   :  { %s1458_s10 = scalar_lea.hbm %s1718_s7, 1024 }
 0x22c   :  { %p1459_p1 = scmp.ne.s32.totalorder %s1718_s7, %s1458_s10  ;;  %p1462_p2 = scmp.lt.u32.totalorder %s1458_s10, %s1718_s7 }
 0x22e   :  { %p1464_p3 = pnand %p1462_p2, %p1459_p1 }
 0x230   :  { %1467 = shalt.err (!%p1464_p3)
}
 0x231   :  { %1026 = dma.vmem_to_hbm [thread:$0]  %s1021_s29, 1024, %s1718_s7, [#allocation5], %s1476_s13, %s1476_s13, %s1477_s14  }
 0x232   :  { %1472 = dma.done.wait [#allocation5], 1024  }
 0x233   :  { %1473 = vsyncadd [#allocation5], 4294966272 }
 0x234   :  { %1030 = vsyncpa [#allocation4], 1 }
 0x235   :  { %1031 = vsyncpa [#allocation7], 1 }
 0x236   :  { %1032 = vsyncpa [#allocation5], 1 }

</bundles_post_ra>
